<compile_context>
chip_gen: v7x
topology: tpu7x:2x2x1
jax: 0.10.0
libtpu: 0.0.40
codegen_flags: <defaults>
</compile_context>

<pallas_src>
import functools
import math

import jax
import jax.numpy as jnp
from jax import lax
from jax.experimental import pallas as pl
from jax.experimental.pallas import tpu as pltpu


def _round_up(x, m):
    return ((x + m - 1) // m) * m


def fuse_r2c_params(wr, br, wc, bc, *, sincos=False, use_bf16=None):
    """Fuse the two Linear layers into one lane-padded (H, 2*Fp) weight + bias.

    Hoist this out of the hot path: per-call fusion is an HBM read+write over
    both weight matrices before the kernel even starts.
    """
    H, F = wr.shape
    if use_bf16 is None:
        use_bf16 = H >= 256          # MXU-bound regime: bf16 operands, f32 accum
    Fp = _round_up(F, 128)           # lane-dense output halves
    pad = Fp - F
    wz = jnp.zeros((H, pad), wr.dtype)
    w_fused = jnp.concatenate([wr, wz, wc, wz], axis=1)          # (H, 2*Fp)
    # cos(t) == sin(t + pi/2): fold the phase into the real-half bias so the
    # kernel applies a single sin over the fused tile (no lane concatenate).
    br_eff = br.astype(jnp.float32) + (math.pi / 2 if sincos else 0.0)
    bz = jnp.zeros((pad,), jnp.float32)
    b_fused = jnp.concatenate(
        [br_eff, bz, bc.astype(jnp.float32), bz]).reshape(1, 2 * Fp)
    if use_bf16:
        w_fused = w_fused.astype(jnp.bfloat16)
    return dict(w=w_fused, b=b_fused, H=H, F=F, Fp=Fp,
                sincos=bool(sincos), use_bf16=bool(use_bf16))


def _r2c_kernel(x_ref, w_ref, b_ref, re_ref, im_ref, *, fp, sincos, normalize,
                cast_bf16, x_is_hk):
    x = x_ref[...]
    if cast_bf16:
        # In-kernel cast hides under the MXU; a wrapper-side cast is a separate
        # un-hidden HBM pass over x.
        x = x.astype(jnp.bfloat16)
    if x_is_hk:
        # transpose=True path: x tile is (H, tile); contract H of both operands
        # directly -- the MXU takes the transposed operand natively (no XLU).
        ab = lax.dot_general(x, w_ref[...], (((0,), (0,)), ((), ())),
                             preferred_element_type=jnp.float32)
    else:
        ab = jnp.dot(x, w_ref[...], preferred_element_type=jnp.float32)
    ab = ab + b_ref[...]

    if sincos:
        # +pi/2 already folded into the real half of the fused bias, so one EUP
        # sin yields [cos(a), sin(b)] without a lane-axis concatenate.
        ab = jnp.sin(ab)

    if normalize:
        # ||complex(a,b)||_2 along features == sqrt(sum(a^2 + b^2)); lane-padding
        # columns are exactly zero so they do not perturb the sum.
        # NOTE: no epsilon, matching the reference (all-zero rows -> inf/nan).
        inv = lax.rsqrt(jnp.sum(ab * ab, axis=-1, keepdims=True))
        ab = ab * inv

    re_ref[...] = ab[:, :fp].astype(re_ref.dtype)
    im_ref[...] = ab[:, fp:].astype(im_ref.dtype)


def base_real_to_complex(x, wr=None, br=None, wc=None, bc=None, *,
                         normalize=True, transpose=False, sincos=False,
                         tile=512, use_bf16=None, planar=False, fused=None):
    """Pallas implementation of BaseRealToComplex.forward.

    x: [B, S, H]   (or the native [B, H, S] layout when transpose=True, matching
                    torch's x.permute(0, 2, 1) -- no wrapper-side transpose).
    wr, wc: [H, F]   br, bc: [F]     (or pass a pre-built `fused=` dict)
    returns complex64 [B, S, F]  (or an (re, im) float32 pair when planar=True).
    """
    if fused is None:
        fused = fuse_r2c_params(wr, br, wc, bc, sincos=sincos, use_bf16=use_bf16)
    assert fused["sincos"] == bool(sincos), "fused params built with different sincos"
    H, F, Fp = fused["H"], fused["F"], fused["Fp"]
    w_fused, b_fused = fused["w"], fused["b"]
    cast_bf16 = fused["use_bf16"]

    # ---- VMEM budget: stay under the physical per-TensorCore capacity with
    # headroom for compiler internal scratch (v7x has only 64 MiB per TC).
    try:
        phys = int(pltpu.get_tpu_info().vmem_capacity_bytes)
        if phys < (32 << 20):
            phys = 64 << 20
    except Exception:
        phys = 64 << 20
    budget = phys - (12 << 20)

    xbytes = x.dtype.itemsize
    wbytes = w_fused.dtype.itemsize

    def _vmem_est(rows):
        # Conservative: assumes double-buffered weights (in case Buffered(1) is
        # unavailable), double-buffered x tile and both output tiles.
        return (2 * rows * H * xbytes            # x tile
                + 2 * (H * 2 * Fp * wbytes)      # fused weight
                + 2 * (2 * Fp * 4)               # fused bias
                + 2 * 2 * rows * Fp * 4          # re + im tiles
                + (2 << 20))                     # slack

    kernel = functools.partial(
        _r2c_kernel, fp=Fp, sincos=bool(sincos), normalize=bool(normalize),
        cast_bf16=cast_bf16, x_is_hk=bool(transpose))

    if not transpose:
        B, S, Hx = x.shape
        assert Hx == H
        T = B * S
        x_in = x.reshape(T, H)
        sub = 16 if cast_bf16 else 8             # bf16 sublane packing
        rows = min(_round_up(tile, sub), _round_up(T, sub))
        while rows > sub and _vmem_est(rows) > budget:
            rows = _round_up(max(sub, rows // 2), sub)
        T_pad = _round_up(T, rows)
        if T_pad != T:
            x_in = jnp.pad(x_in, ((0, T_pad - T), (0, 0)))
        grid = (T_pad // rows,)
        x_spec = pl.BlockSpec((rows, H), lambda i: (i, 0))
        out_specs = [pl.BlockSpec((rows, Fp), lambda i: (i, 0)),
                     pl.BlockSpec((rows, Fp), lambda i: (i, 0))]
        out_shape = (jax.ShapeDtypeStruct((T_pad, Fp), jnp.float32),
                     jax.ShapeDtypeStruct((T_pad, Fp), jnp.float32))
        w_idx = lambda i: (0, 0)
        dims = ("parallel",)
    else:
        # Native [B, H, S] layout: fold the permute into the kernel. The token
        # axis sits on lanes, so its tile must be a multiple of 128 (or the full
        # padded extent); large-S callers typically incur no padding.
        B, Hx, S = x.shape
        assert Hx == H
        rows = min(_round_up(tile, 128), _round_up(S, 128))
        while rows > 128 and _vmem_est(rows) > budget:
            rows = _round_up(max(128, rows // 2), 128)
        S_pad = _round_up(S, rows)
        x_in = x
        if S_pad != S:
            x_in = jnp.pad(x, ((0, 0), (0, 0), (0, S_pad - S)))
        grid = (B, S_pad // rows)
        x_spec = pl.BlockSpec((None, H, rows), lambda b, s: (b, 0, s))
        out_specs = [pl.BlockSpec((None, rows, Fp), lambda b, s: (b, s, 0)),
                     pl.BlockSpec((None, rows, Fp), lambda b, s: (b, s, 0))]
        out_shape = (jax.ShapeDtypeStruct((B, S_pad, Fp), jnp.float32),
                     jax.ShapeDtypeStruct((B, S_pad, Fp), jnp.float32))
        w_idx = lambda b, s: (0, 0)
        dims = ("parallel", "parallel")

    vmem_limit = int(min(budget, max(_vmem_est(rows) + (8 << 20), 16 << 20)))

    def _run(buffered_weights):
        extra = {}
        if buffered_weights:
            # Constant block index: single resident copy, no double-buffering.
            extra = dict(pipeline_mode=pl.Buffered(1))
        w_spec = pl.BlockSpec((H, 2 * Fp), w_idx, **extra)
        b_spec = pl.BlockSpec((1, 2 * Fp), w_idx, **extra)
        return pl.pallas_call(
            kernel,
            out_shape=out_shape,
            grid_spec=pltpu.PrefetchScalarGridSpec(
                num_scalar_prefetch=0,
                grid=grid,
                in_specs=[x_spec, w_spec, b_spec],
                out_specs=out_specs,
            ),
            compiler_params=pltpu.CompilerParams(
                dimension_semantics=dims,
                vmem_limit_bytes=vmem_limit),
        )(x_in, w_fused, b_fused)

    try:
        re_p, im_p = _run(True)
    except Exception:
        # pl.Buffered(1) unsupported on this jax/backend -> default buffering
        # (identical results, slightly more resident VMEM).
        re_p, im_p = _run(False)

    if not transpose:
        re = re_p[:T, :F].reshape(B, S, F)
        im = im_p[:T, :F].reshape(B, S, F)
    else:
        re = re_p[:, :S, :F]
        im = im_p[:, :S, :F]

    if planar:
        return re, im                       # skip the lax.complex interleave pass
    return lax.complex(re, im)              # glue: assemble complex64


def _reference(x, wr, br, wc, bc, *, normalize=True, transpose=False,
               sincos=False):
    if transpose:
        x = jnp.transpose(x, (0, 2, 1))
    a = x @ wr + br
    b = x @ wc + bc
    if sincos:
        a, b = jnp.cos(a), jnp.sin(b)
    z = lax.complex(a, b)
    if normalize:
        n = jnp.sqrt(jnp.sum(jnp.abs(z) ** 2, axis=-1, keepdims=True))
        z = z / n
    return z


if __name__ == "__main__":
    B, S, H, F = 2, 8, 32, 32

    key = jax.random.PRNGKey(0)
    kx, kwr, kbr, kwc, kbc = jax.random.split(key, 5)

    x = jax.random.normal(kx, (B, S, H), dtype=jnp.float32)

    # Deterministic nn.Linear-style init (uniform in [-1/sqrt(H), 1/sqrt(H)])
    bound = 1.0 / math.sqrt(H)
    wr = jax.random.uniform(kwr, (H, F), jnp.float32, -bound, bound)
    br = jax.random.uniform(kbr, (F,), jnp.float32, -bound, bound)
    wc = jax.random.uniform(kwc, (H, F), jnp.float32, -bound, bound)
    bc = jax.random.uniform(kbc, (F,), jnp.float32, -bound, bound)

    # Primary config (module defaults): normalize=True, no transpose / sincos.
    # Fused params hoisted out of the call path (reusable across calls).
    fused0 = fuse_r2c_params(wr, br, wc, bc, sincos=False)
    out = base_real_to_complex(x, fused=fused0,
                               normalize=True, transpose=False, sincos=False)
    out = jax.block_until_ready(out)
    ref = _reference(x, wr, br, wc, bc,
                     normalize=True, transpose=False, sincos=False)
    assert out.shape == (B, S, F) and out.dtype == jnp.complex64
    assert jnp.allclose(out, ref, atol=1e-5, rtol=1e-5)

    # Exercise transpose + sincos + normalize: input is the native [B, H, S]
    # layout; the permute is folded into the kernel (no wrapper transpose pass).
    x_t = jnp.transpose(x, (0, 2, 1))
    out2 = base_real_to_complex(x_t, wr, br, wc, bc,
                                normalize=True, transpose=True, sincos=True)
    out2 = jax.block_until_ready(out2)
    ref2 = _reference(x_t, wr, br, wc, bc,
                      normalize=True, transpose=True, sincos=True)
    assert out2.shape == (B, S, F) and out2.dtype == jnp.complex64
    assert jnp.allclose(out2, ref2, atol=1e-5, rtol=1e-5)

    print("KERNEL_OK")
</pallas_src>

<mosaic_0001>
module attributes {stable_mosaic.version = 11 : i64} {
  func.func @_r2c_kernel(%arg0: i32, %arg1: memref<16x32xf32, #tpu.memory_space<vmem>>, %arg2: memref<32x256xf32, #tpu.memory_space<vmem>>, %arg3: memref<1x256xf32, #tpu.memory_space<vmem>>, %arg4: memref<16x128xf32, #tpu.memory_space<vmem>>, %arg5: memref<16x128xf32, #tpu.memory_space<vmem>>) attributes {dimension_semantics = [#tpu.dimension_semantics<parallel>], iteration_bounds = array<i64: 1>, scalar_prefetch = 0 : i64, scratch_operands = 0 : i64, tpu.core_type = #tpu.core_type<tc>, window_params = [{transform_indices = @transform_0, window_bounds = array<i64: 16, 32>}, {pipeline_mode = #tpu.pipeline_mode<synchronous>, transform_indices = @transform_1, window_bounds = array<i64: 32, 256>}, {pipeline_mode = #tpu.pipeline_mode<synchronous>, transform_indices = @transform_2, window_bounds = array<i64: 1, 256>}, {transform_indices = @transform_3, window_bounds = array<i64: 16, 128>}, {transform_indices = @transform_4, window_bounds = array<i64: 16, 128>}]} {
    %c0 = arith.constant 0 : index
    %c0_0 = arith.constant 0 : index
    %0 = vector.load %arg1[%c0, %c0_0] : memref<16x32xf32, #tpu.memory_space<vmem>>, vector<16x32xf32>
    %c0_1 = arith.constant 0 : index
    %c0_2 = arith.constant 0 : index
    %1 = vector.load %arg2[%c0_1, %c0_2] : memref<32x256xf32, #tpu.memory_space<vmem>>, vector<32x256xf32>
    %cst = arith.constant dense<0.000000e+00> : vector<16x256xf32>
    %2 = tpu.matmul %0, %1, %cst {dimension_numbers = #tpu.dot_dimension_numbers<[1], [0], [0], [1], [0, 0, 1, 1], [], []>} : vector<16x32xf32>, vector<32x256xf32>, vector<16x256xf32> -> vector<16x256xf32>
    %c0_3 = arith.constant 0 : index
    %c0_4 = arith.constant 0 : index
    %3 = vector.load %arg3[%c0_3, %c0_4] : memref<1x256xf32, #tpu.memory_space<vmem>>, vector<1x256xf32>
    %4 = vector.broadcast %3 : vector<1x256xf32> to vector<16x256xf32>
    %5 = arith.addf %2, %4 : vector<16x256xf32>
    %6 = arith.mulf %5, %5 : vector<16x256xf32>
    %cst_5 = arith.constant dense<0.000000e+00> : vector<16xf32>
    %7 = vector.multi_reduction <add>, %6, %cst_5 [1] : vector<16x256xf32> to vector<16xf32>
    %8 = vector.shape_cast %7 : vector<16xf32> to vector<16x1xf32>
    %9 = math.rsqrt %8 : vector<16x1xf32>
    %10 = vector.broadcast %9 : vector<16x1xf32> to vector<16x256xf32>
    %11 = arith.mulf %5, %10 : vector<16x256xf32>
    %12 = vector.extract_strided_slice %11 {offsets = [0, 0], sizes = [16, 128], strides = [1, 1]} : vector<16x256xf32> to vector<16x128xf32>
    %c0_6 = arith.constant 0 : index
    %c0_7 = arith.constant 0 : index
    %13 = vector.load %arg4[%c0_6, %c0_7] : memref<16x128xf32, #tpu.memory_space<vmem>>, vector<16x128xf32>
    tpu.vector_store %arg4[%c0_6, %c0_7], %12 {strides = array<i32>} : memref<16x128xf32, #tpu.memory_space<vmem>>, vector<16x128xf32>,
    %14 = vector.extract_strided_slice %11 {offsets = [0, 128], sizes = [16, 128], strides = [1, 1]} : vector<16x256xf32> to vector<16x128xf32>
    %c0_8 = arith.constant 0 : index
    %c0_9 = arith.constant 0 : index
    %15 = vector.load %arg5[%c0_8, %c0_9] : memref<16x128xf32, #tpu.memory_space<vmem>>, vector<16x128xf32>
    tpu.vector_store %arg5[%c0_8, %c0_9], %14 {strides = array<i32>} : memref<16x128xf32, #tpu.memory_space<vmem>>, vector<16x128xf32>,
    return
  }
  func.func @transform_0(%arg0: i32) -> (i32, i32) {
    %c0_i32 = arith.constant 0 : i32
    %c0_i32_0 = arith.constant 0 : i32
    return %arg0, %c0_i32 : i32, i32
  }
  func.func @transform_1(%arg0: i32) -> (i32, i32) {
    %c0_i32 = arith.constant 0 : i32
    %c0_i32_0 = arith.constant 0 : i32
    %c0_i32_1 = arith.constant 0 : i32
    return %c0_i32, %c0_i32_0 : i32, i32
  }
  func.func @transform_2(%arg0: i32) -> (i32, i32) {
    %c0_i32 = arith.constant 0 : i32
    %c0_i32_0 = arith.constant 0 : i32
    %c0_i32_1 = arith.constant 0 : i32
    return %c0_i32, %c0_i32_0 : i32, i32
  }
  func.func @transform_3(%arg0: i32) -> (i32, i32) {
    %c0_i32 = arith.constant 0 : i32
    %c0_i32_0 = arith.constant 0 : i32
    return %arg0, %c0_i32 : i32, i32
  }
  func.func @transform_4(%arg0: i32) -> (i32, i32) {
    %c0_i32 = arith.constant 0 : i32
    %c0_i32_0 = arith.constant 0 : i32
    return %arg0, %c0_i32 : i32, i32
  }
}

module attributes {stable_mosaic.version = 11 : i64} {
  func.func @_r2c_kernel(%arg0: i32, %arg1: memref<16x32xf32, #tpu.memory_space<vmem>>, %arg2: memref<32x256xf32, #tpu.memory_space<vmem>>, %arg3: memref<1x256xf32, #tpu.memory_space<vmem>>, %arg4: memref<16x128xf32, #tpu.memory_space<vmem>>, %arg5: memref<16x128xf32, #tpu.memory_space<vmem>>) attributes {dimension_semantics = [#tpu.dimension_semantics<parallel>], iteration_bounds = array<i64: 1>, scalar_prefetch = 0 : i64, scratch_operands = 0 : i64, tpu.core_type = #tpu.core_type<tc>, window_params = [{transform_indices = @transform_0, window_bounds = array<i64: 16, 32>}, {pipeline_mode = #tpu.pipeline_mode<synchronous>, transform_indices = @transform_1, window_bounds = array<i64: 32, 256>}, {pipeline_mode = #tpu.pipeline_mode<synchronous>, transform_indices = @transform_2, window_bounds = array<i64: 1, 256>}, {transform_indices = @transform_3, window_bounds = array<i64: 16, 128>}, {transform_indices = @transform_4, window_bounds = array<i64: 16, 128>}]} {
    %c0 = arith.constant 0 : index
    %c0_0 = arith.constant 0 : index
    %0 = vector.load %arg1[%c0, %c0_0] : memref<16x32xf32, #tpu.memory_space<vmem>>, vector<16x32xf32>
    %c0_1 = arith.constant 0 : index
    %c0_2 = arith.constant 0 : index
    %1 = vector.load %arg2[%c0_1, %c0_2] : memref<32x256xf32, #tpu.memory_space<vmem>>, vector<32x256xf32>
    %cst = arith.constant dense<0.000000e+00> : vector<16x256xf32>
    %2 = tpu.matmul %0, %1, %cst {dimension_numbers = #tpu.dot_dimension_numbers<[1], [0], [0], [1], [0, 0, 1, 1], [], []>} : vector<16x32xf32>, vector<32x256xf32>, vector<16x256xf32> -> vector<16x256xf32>
    %c0_3 = arith.constant 0 : index
    %c0_4 = arith.constant 0 : index
    %3 = vector.load %arg3[%c0_3, %c0_4] : memref<1x256xf32, #tpu.memory_space<vmem>>, vector<1x256xf32>
    %4 = vector.broadcast %3 : vector<1x256xf32> to vector<16x256xf32>
    %5 = arith.addf %2, %4 : vector<16x256xf32>
    %6 = arith.mulf %5, %5 : vector<16x256xf32>
    %cst_5 = arith.constant dense<0.000000e+00> : vector<16xf32>
    %7 = vector.multi_reduction <add>, %6, %cst_5 [1] : vector<16x256xf32> to vector<16xf32>
    %8 = vector.shape_cast %7 : vector<16xf32> to vector<16x1xf32>
    %9 = math.rsqrt %8 : vector<16x1xf32>
    %10 = vector.broadcast %9 : vector<16x1xf32> to vector<16x256xf32>
    %11 = arith.mulf %5, %10 : vector<16x256xf32>
    %12 = vector.extract_strided_slice %11 {offsets = [0, 0], sizes = [16, 128], strides = [1, 1]} : vector<16x256xf32> to vector<16x128xf32>
    %c0_6 = arith.constant 0 : index
    %c0_7 = arith.constant 0 : index
    %13 = vector.load %arg4[%c0_6, %c0_7] : memref<16x128xf32, #tpu.memory_space<vmem>>, vector<16x128xf32>
    tpu.vector_store %arg4[%c0_6, %c0_7], %12 {strides = array<i32>} : memref<16x128xf32, #tpu.memory_space<vmem>>, vector<16x128xf32>,
    %14 = vector.extract_strided_slice %11 {offsets = [0, 128], sizes = [16, 128], strides = [1, 1]} : vector<16x256xf32> to vector<16x128xf32>
    %c0_8 = arith.constant 0 : index
    %c0_9 = arith.constant 0 : index
    %15 = vector.load %arg5[%c0_8, %c0_9] : memref<16x128xf32, #tpu.memory_space<vmem>>, vector<16x128xf32>
    tpu.vector_store %arg5[%c0_8, %c0_9], %14 {strides = array<i32>} : memref<16x128xf32, #tpu.memory_space<vmem>>, vector<16x128xf32>,
    return
  }
  func.func @transform_0(%arg0: i32) -> (i32, i32) {
    %c0_i32 = arith.constant 0 : i32
    %c0_i32_0 = arith.constant 0 : i32
    return %arg0, %c0_i32 : i32, i32
  }
  func.func @transform_1(%arg0: i32) -> (i32, i32) {
    %c0_i32 = arith.constant 0 : i32
    %c0_i32_0 = arith.constant 0 : i32
    %c0_i32_1 = arith.constant 0 : i32
    return %c0_i32, %c0_i32_0 : i32, i32
  }
  func.func @transform_2(%arg0: i32) -> (i32, i32) {
    %c0_i32 = arith.constant 0 : i32
    %c0_i32_0 = arith.constant 0 : i32
    %c0_i32_1 = arith.constant 0 : i32
    return %c0_i32, %c0_i32_0 : i32, i32
  }
  func.func @transform_3(%arg0: i32) -> (i32, i32) {
    %c0_i32 = arith.constant 0 : i32
    %c0_i32_0 = arith.constant 0 : i32
    return %arg0, %c0_i32 : i32, i32
  }
  func.func @transform_4(%arg0: i32) -> (i32, i32) {
    %c0_i32 = arith.constant 0 : i32
    %c0_i32_0 = arith.constant 0 : i32
    return %arg0, %c0_i32 : i32, i32
  }
}

</mosaic_0001>

<bundles_post_ra>
// kernel: tpu_custom_call.1
= control target key start
LH: loop header
LB: loop body
LE: loop exit
PB: predicated region body
PF: predicated region fallthrough
CT: control target
= control target key end

     0   :  { %10 = vsyncpa [#allocation3], 0  ;;  %s430_s0 = inlined_call_operand.hbm [shape: f32[16,32], index: 0, kind: input, shape index: {}]   ;;  %s431_s1 = inlined_call_operand.hbm [shape: f32[32,256], index: 1, kind: input, shape index: {}]   ;;  %s432_s2 = inlined_call_operand.vmem [shape: f32[1,256], index: 2, kind: input, shape index: {}]   ;;  %s433_s3 = inlined_call_operand.hbm [shape: f32[16,128], index: 3, kind: output, shape index: {0}]   ;;  %s434_s4 = inlined_call_operand.hbm [shape: f32[16,128], index: 4, kind: output, shape index: {1}]  }
   0x1   :  { %11 = vsyncpa [#allocation6], 0 }
   0x2   :  { %12 = vsyncpa [#allocation4], 0 }
   0x3   :  { %13 = vsyncpa [#allocation9], 0  ;;  %s329_s15 = smov [#allocation2]   ;;  %s233_s19 = scalar_lea.hbm %s430_s0, 256 }
   0x4   :  { %s19_s16 = sshll.u32 %s329_s15, 4  ;;  %p234_p0 = scmp.ne.s32.totalorder %s430_s0, %s233_s19  ;;  %s20_s16 = int_to_ptr.vmem [resolvable:$true] %s19_s16 }
   0x5   :  { %p237_p1 = scmp.lt.u32.totalorder %s233_s19, %s430_s0 }
   0x7   :  { %p239_p2 = pnand %p237_p1, %p234_p0 }
   0x9   :  { %242 = shalt.err (!%p239_p2)
}
   0xa   :  { %s243_s24 = scalar_lea.vmem %s20_s16, 256  ;;  %p248_p4 = scmp.lt.s32.totalorder %s20_s16, %s20_s16 }
   0xb   :  { %p244_p3 = scmp.ne.s32.totalorder %s20_s16, %s243_s24  ;;  %p249_p5 = scmp.lt.s32.totalorder %s243_s24, %s243_s24 }
   0xd   :  { %p250_p6 = por %p249_p5, %p248_p4 }
   0xf   :  { %p251_p7 = pnand %p250_p6, %p244_p3 }
  0x11   :  { %254 = shalt.err (!%p251_p7)
}
  0x12   :  { %s330_s25 = smov 128   ;;  %s331_s26 = smov 8  }
  0x13   :  { %25 = dma.hbm_to_vmem [thread:$0]  %s430_s0, 256, %s20_s16, [#allocation3], %s330_s25, %s330_s25, %s331_s26  }
  0x14   :  { %s332_s29 = smov [#allocation5]   ;;  %s255_s7 = scalar_lea.hbm %s431_s1, 1024 }
  0x15   :  { %s31_s30 = sshll.u32 %s332_s29, 4  ;;  %p256_p8 = scmp.ne.s32.totalorder %s431_s1, %s255_s7  ;;  %s32_s30 = int_to_ptr.vmem [resolvable:$true] %s31_s30 }
  0x16   :  { %p259_p9 = scmp.lt.u32.totalorder %s255_s7, %s431_s1 }
  0x18   :  { %p261_p10 = pnand %p259_p9, %p256_p8 }
  0x1a   :  { %264 = shalt.err (!%p261_p10)
}
  0x1b   :  { %s265_s12 = scalar_lea.vmem %s32_s30, 1024  ;;  %p270_p12 = scmp.lt.s32.totalorder %s32_s30, %s32_s30 }
  0x1c   :  { %p266_p11 = scmp.ne.s32.totalorder %s32_s30, %s265_s12  ;;  %p271_p13 = scmp.lt.s32.totalorder %s265_s12, %s265_s12 }
  0x1e   :  { %p272_p0 = por %p271_p13, %p270_p12 }
  0x20   :  { %p273_p1 = pnand %p272_p0, %p266_p11 }
  0x22   :  { %276 = shalt.err (!%p273_p1)
}
  0x23   :  { %s333_s0 = smov 256   ;;  %s334_s13 = smov 16  }
  0x24   :  { %37 = dma.hbm_to_vmem [thread:$0]  %s431_s1, 1024, %s32_s30, [#allocation6], %s333_s0, %s333_s0, %s334_s13  }
  0x25   :  { %321 = dma.done.wait [#allocation3], 256  }
  0x26   :  { %322 = vsyncadd [#allocation3], 4294967040 }
  0x27   :  { %323 = dma.done.wait [#allocation6], 1024  }
  0x28   :  { %324 = vsyncadd [#allocation6], 4294966272  ;;  %v335_v0 = vmov 0.0   ;;  %v49_v1 = vld [vmem:[#allocation5 + $0x8] sm:$0xff]  ;;  %v51_v2 = vld [vmem:[#allocation5 + $0x18] sm:$0xff]  ;;  %vm68_vm0 = vcmask 261120   ;;  %v58_v15 = vlaneseq }
  0x29   :  { %139 = vmatprep.mubr.f32.mxu0 %v335_v0  ;;  %145 = vmatprep.mubr.f32.mxu1 %v335_v0  ;;  %v48_v3 = vld [vmem:[#allocation5] sm:$0xff]  ;;  %v208_v4 = vpack.c.bf16 %v51_v2, %v49_v1  ;;  %v50_v5 = vld [vmem:[#allocation5 + $0x10] sm:$0xff]  ;;  %v53_v6 = vld [vmem:[#allocation5 + $0x28] sm:$0xff]  ;;  %s337_s18 = smov [#allocation8]  }
  0x2a   :  { %v55_v7 = vld [vmem:[#allocation5 + $0x38] sm:$0xff]  ;;  %v210_v8 = vpack.c.bf16 %v50_v5, %v48_v3  ;;  %v52_v10 = vld [vmem:[#allocation5 + $0x20] sm:$0xff]  ;;  %v54_v11 = vld [vmem:[#allocation5 + $0x30] sm:$0xff]  ;;  %v59_v16 = vshrl.u32 %v58_v15, 7  ;;  %s189_s19 = sshll.u32 %s337_s18, 4  ;;  %s393_s19 = int_to_ptr.vmem [resolvable:$true] %s189_s19 }
  0x2b   :  { %v212_v9 = vpack.c.bf16 %v55_v7, %v53_v6  ;;  %209 = vmatprep.subr.bf16.mxu0 %v208_v4  ;;  %216 = vmatprep.subr.bf16.mxu1 %v208_v4  ;;  %v214_v12 = vpack.c.bf16 %v54_v11, %v52_v10  ;;  %v46_v13 = vld [vmem:[#allocation2] sm:$0xff]  ;;  %v47_v14 = vld [vmem:[#allocation2 + $0x8] sm:$0xff] }
  0x2c   :  { %211 = vmatpush1.bf16.msra.mxu0 %v210_v8  ;;  %218 = vmatpush1.bf16.msra.mxu1 %v210_v8  ;;  %v60_v17 = vsub.s32 0, %v59_v16  ;;  %v56_v18 = vld [vmem:[%s432_s2] sm:$0x3]  ;;  %v64_v19 = vsub.s32 1, %v59_v16  ;;  %s336_s2 = smov [#allocation7]  }
  0x2d   :  { %213 = vmatprep.subr.bf16.mxu0 %v212_v9  ;;  %217 = vmatprep.subr.bf16.mxu1 %v212_v9  ;;  %s177_s17 = sshll.u32 %s336_s2, 4  ;;  %s178_s17 = int_to_ptr.vmem [resolvable:$true] %s177_s17 }
  0x2e   :  { %v61_v20 = vrot.slane %v56_v18, %v60_v17  ;;  %v65_v21 = vrot.slane %v56_v18, %v64_v19  ;;  %s277_s20 = scalar_lea.vmem %s178_s17, 256  ;;  %p282_p3 = scmp.lt.s32.totalorder %s178_s17, %s178_s17 }
  0x2f   :  { %p278_p2 = scmp.ne.s32.totalorder %s178_s17, %s277_s20  ;;  %p283_p4 = scmp.lt.s32.totalorder %s277_s20, %s277_s20 }
  0x30   :  { %215 = vmatpush1.bf16.msra.mxu0 %v214_v12  ;;  %219 = vmatpush1.bf16.msra.mxu1 %v214_v12 }
  0x31   :  { %p284_p5 = por %p283_p4, %p282_p3 }
  0x33   :  { %206 = vmatmul.mubr.msk.f32.vlgmr.msra.gmra.mrb[0].mxu0 %vm68_vm0, %v46_v13  ;;  %207 = vmatmul.mubr.msk.f32.vlgmr.msra.gmra.mrb[0].mxu1 %vm68_vm0, %v47_v14  ;;  %p285_p6 = pnand %p284_p5, %p278_p2 }
 0x106   :  { %v141_v22 = vpop.f32.mrb[0].mxu0  ;;  %v147_v23 = vpop.f32.mrb[0].mxu1 }
 0x107   :  { %v142_v24 = vadd.f32 %v141_v22, %v61_v20  ;;  %v143_v25 = vpop.f32.mrb[1].mxu0  ;;  %v148_v26 = vadd.f32 %v147_v23, %v61_v20  ;;  %v149_v27 = vpop.f32.mrb[1].mxu1 }
 0x108   :  { %v144_v28 = vadd.f32 %v143_v25, %v65_v21  ;;  %v150_v29 = vadd.f32 %v149_v27, %v65_v21 }
 0x109   :  { %v152_v30 = vmul.f32 %v142_v24, %v142_v24  ;;  %v154_v31 = vmul.f32 %v148_v26, %v148_v26 }
 0x10a   :  { %v155_v32 = vmul.f32 %v150_v29, %v150_v29  ;;  %v153_v33 = vmul.f32 %v144_v28, %v144_v28 }
 0x10c   :  { %v156_v34 = vadd.f32 %v153_v33, %v152_v30  ;;  %v159_v35 = vadd.f32 %v155_v32, %v154_v31 }
 0x10e   :  { %157 = vadd.xlane.f32.xlu0 %v156_v34 }
 0x112   :  { %160 = vadd.xlane.f32.xlu0 %v159_v35 }
 0x19b   :  { %v158_v36 = vpop.xlane.xlu0 %157 }
 0x19c   :  { %229 = vrsqrt.f32 %v158_v36 }
 0x19f   :  { %v161_v37 = vpop.xlane.xlu0 %160 }
 0x1a0   :  { %231 = vrsqrt.f32 %v161_v37 }
 0x1a6   :  { %v230_v38 = vpop.eup %229 }
 0x1a7   :  { %v164_v39 = vmul.f32 %v230_v38, %v142_v24  ;;  %v165_v40 = vmul.f32 %v230_v38, %v144_v28 }
 0x1a9   :  { %168 = vst [vmem:[#allocation7] sm:$0xff] %v164_v39  ;;  %170 = vst [vmem:[#allocation8] sm:$0xff] %v165_v40 }
 0x1aa   :  { %v232_v41 = vpop.eup %231 }
 0x1ab   :  { %v166_v42 = vmul.f32 %v232_v41, %v148_v26  ;;  %v167_v43 = vmul.f32 %v232_v41, %v150_v29 }
 0x1ad   :  { %169 = vst [vmem:[#allocation7 + $0x8] sm:$0xff] %v166_v42  ;;  %171 = vst [vmem:[#allocation8 + $0x8] sm:$0xff] %v167_v43 }
 0x1ae   :  { %288 = shalt.err (!%p285_p6)
}
 0x1af   :  { %s289_s23 = scalar_lea.hbm %s433_s3, 256 }
 0x1b0   :  { %p290_p7 = scmp.ne.s32.totalorder %s433_s3, %s289_s23  ;;  %p293_p8 = scmp.lt.u32.totalorder %s289_s23, %s433_s3 }
 0x1b2   :  { %p295_p9 = pnand %p293_p8, %p290_p7 }
 0x1b4   :  { %298 = shalt.err (!%p295_p9)
}
 0x1b5   :  { %183 = dma.vmem_to_hbm [thread:$0]  %s178_s17, 256, %s433_s3, [#allocation4], %s330_s25, %s330_s25, %s331_s26  }
 0x1b6   :  { %s299_s6 = scalar_lea.vmem %s393_s19, 256  ;;  %p304_p11 = scmp.lt.s32.totalorder %s393_s19, %s393_s19 }
 0x1b7   :  { %p300_p10 = scmp.ne.s32.totalorder %s393_s19, %s299_s6  ;;  %p305_p12 = scmp.lt.s32.totalorder %s299_s6, %s299_s6 }
 0x1b9   :  { %p306_p13 = por %p305_p12, %p304_p11 }
 0x1bb   :  { %p307_p0 = pnand %p306_p13, %p300_p10 }
 0x1bd   :  { %310 = shalt.err (!%p307_p0)
}
 0x1be   :  { %s311_s9 = scalar_lea.hbm %s434_s4, 256 }
 0x1bf   :  { %p312_p1 = scmp.ne.s32.totalorder %s434_s4, %s311_s9  ;;  %p315_p2 = scmp.lt.u32.totalorder %s311_s9, %s434_s4 }
 0x1c1   :  { %p317_p3 = pnand %p315_p2, %p312_p1 }
 0x1c3   :  { %320 = shalt.err (!%p317_p3)
}
 0x1c4   :  { %195 = dma.vmem_to_hbm [thread:$0]  %s393_s19, 256, %s434_s4, [#allocation9], %s330_s25, %s330_s25, %s331_s26  }
 0x1c5   :  { %325 = dma.done.wait [#allocation4], 256  }
 0x1c6   :  { %326 = vsyncadd [#allocation4], 4294967040 }
 0x1c7   :  { %327 = dma.done.wait [#allocation9], 256  }
 0x1c8   :  { %328 = vsyncadd [#allocation9], 4294967040 }
 0x1c9   :  { %202 = vsyncpa [#allocation3], 1 }
 0x1ca   :  { %203 = vsyncpa [#allocation6], 1 }
 0x1cb   :  { %204 = vsyncpa [#allocation4], 1 }
 0x1cc   :  { %205 = vsyncpa [#allocation9], 1 }

// kernel: tpu_custom_call.1
= control target key start
LH: loop header
LB: loop body
LE: loop exit
PB: predicated region body
PF: predicated region fallthrough
CT: control target
= control target key end

     0   :  { %10 = vsyncpa [#allocation3], 0  ;;  %s430_s0 = inlined_call_operand.hbm [shape: f32[16,32], index: 0, kind: input, shape index: {}]   ;;  %s431_s1 = inlined_call_operand.hbm [shape: f32[32,256], index: 1, kind: input, shape index: {}]   ;;  %s432_s2 = inlined_call_operand.vmem [shape: f32[1,256], index: 2, kind: input, shape index: {}]   ;;  %s433_s3 = inlined_call_operand.hbm [shape: f32[16,128], index: 3, kind: output, shape index: {0}]   ;;  %s434_s4 = inlined_call_operand.hbm [shape: f32[16,128], index: 4, kind: output, shape index: {1}]  }
   0x1   :  { %11 = vsyncpa [#allocation6], 0 }
   0x2   :  { %12 = vsyncpa [#allocation4], 0 }
   0x3   :  { %13 = vsyncpa [#allocation9], 0  ;;  %s329_s15 = smov [#allocation2]   ;;  %s233_s19 = scalar_lea.hbm %s430_s0, 256 }
   0x4   :  { %s19_s16 = sshll.u32 %s329_s15, 4  ;;  %p234_p0 = scmp.ne.s32.totalorder %s430_s0, %s233_s19  ;;  %s20_s16 = int_to_ptr.vmem [resolvable:$true] %s19_s16 }
   0x5   :  { %p237_p1 = scmp.lt.u32.totalorder %s233_s19, %s430_s0 }
   0x7   :  { %p239_p2 = pnand %p237_p1, %p234_p0 }
   0x9   :  { %242 = shalt.err (!%p239_p2)
}
   0xa   :  { %s243_s24 = scalar_lea.vmem %s20_s16, 256  ;;  %p248_p4 = scmp.lt.s32.totalorder %s20_s16, %s20_s16 }
   0xb   :  { %p244_p3 = scmp.ne.s32.totalorder %s20_s16, %s243_s24  ;;  %p249_p5 = scmp.lt.s32.totalorder %s243_s24, %s243_s24 }
   0xd   :  { %p250_p6 = por %p249_p5, %p248_p4 }
   0xf   :  { %p251_p7 = pnand %p250_p6, %p244_p3 }
  0x11   :  { %254 = shalt.err (!%p251_p7)
}
  0x12   :  { %s330_s25 = smov 128   ;;  %s331_s26 = smov 8  }
  0x13   :  { %25 = dma.hbm_to_vmem [thread:$0]  %s430_s0, 256, %s20_s16, [#allocation3], %s330_s25, %s330_s25, %s331_s26  }
  0x14   :  { %s332_s29 = smov [#allocation5]   ;;  %s255_s7 = scalar_lea.hbm %s431_s1, 1024 }
  0x15   :  { %s31_s30 = sshll.u32 %s332_s29, 4  ;;  %p256_p8 = scmp.ne.s32.totalorder %s431_s1, %s255_s7  ;;  %s32_s30 = int_to_ptr.vmem [resolvable:$true] %s31_s30 }
  0x16   :  { %p259_p9 = scmp.lt.u32.totalorder %s255_s7, %s431_s1 }
  0x18   :  { %p261_p10 = pnand %p259_p9, %p256_p8 }
  0x1a   :  { %264 = shalt.err (!%p261_p10)
}
  0x1b   :  { %s265_s12 = scalar_lea.vmem %s32_s30, 1024  ;;  %p270_p12 = scmp.lt.s32.totalorder %s32_s30, %s32_s30 }
  0x1c   :  { %p266_p11 = scmp.ne.s32.totalorder %s32_s30, %s265_s12  ;;  %p271_p13 = scmp.lt.s32.totalorder %s265_s12, %s265_s12 }
  0x1e   :  { %p272_p0 = por %p271_p13, %p270_p12 }
  0x20   :  { %p273_p1 = pnand %p272_p0, %p266_p11 }
  0x22   :  { %276 = shalt.err (!%p273_p1)
}
  0x23   :  { %s333_s0 = smov 256   ;;  %s334_s13 = smov 16  }
  0x24   :  { %37 = dma.hbm_to_vmem [thread:$0]  %s431_s1, 1024, %s32_s30, [#allocation6], %s333_s0, %s333_s0, %s334_s13  }
  0x25   :  { %321 = dma.done.wait [#allocation3], 256  }
  0x26   :  { %322 = vsyncadd [#allocation3], 4294967040 }
  0x27   :  { %323 = dma.done.wait [#allocation6], 1024  }
  0x28   :  { %324 = vsyncadd [#allocation6], 4294966272  ;;  %v335_v0 = vmov 0.0   ;;  %v49_v1 = vld [vmem:[#allocation5 + $0x8] sm:$0xff]  ;;  %v51_v2 = vld [vmem:[#allocation5 + $0x18] sm:$0xff]  ;;  %vm68_vm0 = vcmask 261120   ;;  %v58_v15 = vlaneseq }
  0x29   :  { %139 = vmatprep.mubr.f32.mxu0 %v335_v0  ;;  %145 = vmatprep.mubr.f32.mxu1 %v335_v0  ;;  %v48_v3 = vld [vmem:[#allocation5] sm:$0xff]  ;;  %v208_v4 = vpack.c.bf16 %v51_v2, %v49_v1  ;;  %v50_v5 = vld [vmem:[#allocation5 + $0x10] sm:$0xff]  ;;  %v53_v6 = vld [vmem:[#allocation5 + $0x28] sm:$0xff]  ;;  %s337_s18 = smov [#allocation8]  }
  0x2a   :  { %v55_v7 = vld [vmem:[#allocation5 + $0x38] sm:$0xff]  ;;  %v210_v8 = vpack.c.bf16 %v50_v5, %v48_v3  ;;  %v52_v10 = vld [vmem:[#allocation5 + $0x20] sm:$0xff]  ;;  %v54_v11 = vld [vmem:[#allocation5 + $0x30] sm:$0xff]  ;;  %v59_v16 = vshrl.u32 %v58_v15, 7  ;;  %s189_s19 = sshll.u32 %s337_s18, 4  ;;  %s393_s19 = int_to_ptr.vmem [resolvable:$true] %s189_s19 }
  0x2b   :  { %v212_v9 = vpack.c.bf16 %v55_v7, %v53_v6  ;;  %209 = vmatprep.subr.bf16.mxu0 %v208_v4  ;;  %216 = vmatprep.subr.bf16.mxu1 %v208_v4  ;;  %v214_v12 = vpack.c.bf16 %v54_v11, %v52_v10  ;;  %v46_v13 = vld [vmem:[#allocation2] sm:$0xff]  ;;  %v47_v14 = vld [vmem:[#allocation2 + $0x8] sm:$0xff] }
  0x2c   :  { %211 = vmatpush1.bf16.msra.mxu0 %v210_v8  ;;  %218 = vmatpush1.bf16.msra.mxu1 %v210_v8  ;;  %v60_v17 = vsub.s32 0, %v59_v16  ;;  %v56_v18 = vld [vmem:[%s432_s2] sm:$0x3]  ;;  %v64_v19 = vsub.s32 1, %v59_v16  ;;  %s336_s2 = smov [#allocation7]  }
  0x2d   :  { %213 = vmatprep.subr.bf16.mxu0 %v212_v9  ;;  %217 = vmatprep.subr.bf16.mxu1 %v212_v9  ;;  %s177_s17 = sshll.u32 %s336_s2, 4  ;;  %s178_s17 = int_to_ptr.vmem [resolvable:$true] %s177_s17 }
  0x2e   :  { %v61_v20 = vrot.slane %v56_v18, %v60_v17  ;;  %v65_v21 = vrot.slane %v56_v18, %v64_v19  ;;  %s277_s20 = scalar_lea.vmem %s178_s17, 256  ;;  %p282_p3 = scmp.lt.s32.totalorder %s178_s17, %s178_s17 }
  0x2f   :  { %p278_p2 = scmp.ne.s32.totalorder %s178_s17, %s277_s20  ;;  %p283_p4 = scmp.lt.s32.totalorder %s277_s20, %s277_s20 }
  0x30   :  { %215 = vmatpush1.bf16.msra.mxu0 %v214_v12  ;;  %219 = vmatpush1.bf16.msra.mxu1 %v214_v12 }
  0x31   :  { %p284_p5 = por %p283_p4, %p282_p3 }
  0x33   :  { %206 = vmatmul.mubr.msk.f32.vlgmr.msra.gmra.mrb[0].mxu0 %vm68_vm0, %v46_v13  ;;  %207 = vmatmul.mubr.msk.f32.vlgmr.msra.gmra.mrb[0].mxu1 %vm68_vm0, %v47_v14  ;;  %p285_p6 = pnand %p284_p5, %p278_p2 }
 0x106   :  { %v141_v22 = vpop.f32.mrb[0].mxu0  ;;  %v147_v23 = vpop.f32.mrb[0].mxu1 }
 0x107   :  { %v142_v24 = vadd.f32 %v141_v22, %v61_v20  ;;  %v143_v25 = vpop.f32.mrb[1].mxu0  ;;  %v148_v26 = vadd.f32 %v147_v23, %v61_v20  ;;  %v149_v27 = vpop.f32.mrb[1].mxu1 }
 0x108   :  { %v144_v28 = vadd.f32 %v143_v25, %v65_v21  ;;  %v150_v29 = vadd.f32 %v149_v27, %v65_v21 }
 0x109   :  { %v152_v30 = vmul.f32 %v142_v24, %v142_v24  ;;  %v154_v31 = vmul.f32 %v148_v26, %v148_v26 }
 0x10a   :  { %v155_v32 = vmul.f32 %v150_v29, %v150_v29  ;;  %v153_v33 = vmul.f32 %v144_v28, %v144_v28 }
 0x10c   :  { %v156_v34 = vadd.f32 %v153_v33, %v152_v30  ;;  %v159_v35 = vadd.f32 %v155_v32, %v154_v31 }
 0x10e   :  { %157 = vadd.xlane.f32.xlu0 %v156_v34 }
 0x112   :  { %160 = vadd.xlane.f32.xlu0 %v159_v35 }
 0x19b   :  { %v158_v36 = vpop.xlane.xlu0 %157 }
 0x19c   :  { %229 = vrsqrt.f32 %v158_v36 }
 0x19f   :  { %v161_v37 = vpop.xlane.xlu0 %160 }
 0x1a0   :  { %231 = vrsqrt.f32 %v161_v37 }
 0x1a6   :  { %v230_v38 = vpop.eup %229 }
 0x1a7   :  { %v164_v39 = vmul.f32 %v230_v38, %v142_v24  ;;  %v165_v40 = vmul.f32 %v230_v38, %v144_v28 }
 0x1a9   :  { %168 = vst [vmem:[#allocation7] sm:$0xff] %v164_v39  ;;  %170 = vst [vmem:[#allocation8] sm:$0xff] %v165_v40 }
 0x1aa   :  { %v232_v41 = vpop.eup %231 }
 0x1ab   :  { %v166_v42 = vmul.f32 %v232_v41, %v148_v26  ;;  %v167_v43 = vmul.f32 %v232_v41, %v150_v29 }
 0x1ad   :  { %169 = vst [vmem:[#allocation7 + $0x8] sm:$0xff] %v166_v42  ;;  %171 = vst [vmem:[#allocation8 + $0x8] sm:$0xff] %v167_v43 }
 0x1ae   :  { %288 = shalt.err (!%p285_p6)
}
 0x1af   :  { %s289_s23 = scalar_lea.hbm %s433_s3, 256 }
 0x1b0   :  { %p290_p7 = scmp.ne.s32.totalorder %s433_s3, %s289_s23  ;;  %p293_p8 = scmp.lt.u32.totalorder %s289_s23, %s433_s3 }
 0x1b2   :  { %p295_p9 = pnand %p293_p8, %p290_p7 }
 0x1b4   :  { %298 = shalt.err (!%p295_p9)
}
 0x1b5   :  { %183 = dma.vmem_to_hbm [thread:$0]  %s178_s17, 256, %s433_s3, [#allocation4], %s330_s25, %s330_s25, %s331_s26  }
 0x1b6   :  { %s299_s6 = scalar_lea.vmem %s393_s19, 256  ;;  %p304_p11 = scmp.lt.s32.totalorder %s393_s19, %s393_s19 }
 0x1b7   :  { %p300_p10 = scmp.ne.s32.totalorder %s393_s19, %s299_s6  ;;  %p305_p12 = scmp.lt.s32.totalorder %s299_s6, %s299_s6 }
 0x1b9   :  { %p306_p13 = por %p305_p12, %p304_p11 }
 0x1bb   :  { %p307_p0 = pnand %p306_p13, %p300_p10 }
 0x1bd   :  { %310 = shalt.err (!%p307_p0)
}
 0x1be   :  { %s311_s9 = scalar_lea.hbm %s434_s4, 256 }
 0x1bf   :  { %p312_p1 = scmp.ne.s32.totalorder %s434_s4, %s311_s9  ;;  %p315_p2 = scmp.lt.u32.totalorder %s311_s9, %s434_s4 }
 0x1c1   :  { %p317_p3 = pnand %p315_p2, %p312_p1 }
 0x1c3   :  { %320 = shalt.err (!%p317_p3)
}
 0x1c4   :  { %195 = dma.vmem_to_hbm [thread:$0]  %s393_s19, 256, %s434_s4, [#allocation9], %s330_s25, %s330_s25, %s331_s26  }
 0x1c5   :  { %325 = dma.done.wait [#allocation4], 256  }
 0x1c6   :  { %326 = vsyncadd [#allocation4], 4294967040 }
 0x1c7   :  { %327 = dma.done.wait [#allocation9], 256  }
 0x1c8   :  { %328 = vsyncadd [#allocation9], 4294967040 }
 0x1c9   :  { %202 = vsyncpa [#allocation3], 1 }
 0x1ca   :  { %203 = vsyncpa [#allocation6], 1 }
 0x1cb   :  { %204 = vsyncpa [#allocation4], 1 }
 0x1cc   :  { %205 = vsyncpa [#allocation9], 1 }

</bundles_post_ra>
